<compile_context>
chip_gen: v7x
topology: tpu7x:2x2x1
jax: 0.10.0
libtpu: 0.0.40
codegen_flags: <defaults>
</compile_context>

<pallas_src>
import functools

import jax
import jax.numpy as jnp
from jax import lax
from jax.experimental import pallas as pl
from jax.experimental.pallas import tpu as pltpu

EPS = 1e-5                      # torch.nn.BatchNorm1d default eps
F1, F2 = 25, 50                 # hidden widths
MAX_TILE_N = 16 * 1024          # lanes per grid step (multiple of 128)
VMEM_LIMIT = 32 * 1024 * 1024   # explicit scoped-VMEM budget (all generations)

# Packed static-parameter column layout, buffer shape (F2, 32) = (50, 32):
#   cols  0..24 : W2          (50, 25)  torch (out, in) layout
#   col   25    : W1 column   (rows 0..24)
#   col   26    : gamma1      (rows 0..24)
#   col   27    : beta1       (rows 0..24)
#   col   28    : gamma2      (50,)
#   col   29    : beta2       (50,)
#   col   30    : W3 column   (50,)
#   col   31    : b3          (row 0)
# b1 / b2 are mathematically dead (BatchNorm subtracts the batch mean).


def _round_up(v, m):
    return (v + m - 1) // m * m


def _h1_h2(x, p_ref, dyn1_ref):
    """Recompute h1 = ReLU(BN1(L1(x))) (analytically folded) and the layer-2
    pre-activation h2 = W2 @ h1.   x: (1, T) f32  ->  (F2, T) f32."""
    a1 = dyn1_ref[:, 0:1]                          # (25, 1) folded L1+BN1 scale
    c1 = dyn1_ref[:, 1:2]                          # (25, 1) folded L1+BN1 shift
    h1 = jnp.maximum(a1 * x + c1, 0.0)             # (25, T)  one VPU FMA + max
    w2 = p_ref[:, 0:F1].astype(jnp.bfloat16)       # (50, 25) bf16 MXU operand
    return jnp.dot(w2, h1.astype(jnp.bfloat16),
                   preferred_element_type=jnp.float32)      # (50, T) f32


def stats_kernel(x_ref, p_ref, dyn1_ref, s_ref, ss_ref, *, valid_n):
    """Pass 1: per-tile partial sum / sum-of-squares of the layer-2
    pre-activation (single-pass BN2 statistics). Tail lanes are masked so the
    wrapper can divide by the true batch size."""
    x = x_ref[...]                                           # (1, T)
    h2 = _h1_h2(x, p_ref, dyn1_ref)                          # (50, T)
    t = x.shape[1]
    lane = lax.broadcasted_iota(jnp.int32, (1, t), 1) + pl.program_id(0) * t
    h2 = jnp.where(lane < valid_n, h2, 0.0)                  # mask padded lanes
    s_ref[...] = jnp.sum(h2, axis=1, keepdims=True)[None]    # (1, 50, 1)
    ss_ref[...] = jnp.sum(h2 * h2, axis=1, keepdims=True)[None]


def apply_kernel(x_ref, p_ref, dyn1_ref, dyn2_ref, o_ref):
    """Pass 2: recompute h1/h2 (cheaper than spilling (50,N) to HBM), then
    apply BN2 + ReLU + layer-3 weighted sublane reduce in a single read."""
    x = x_ref[...]                                           # (1, T)
    h2 = _h1_h2(x, p_ref, dyn1_ref)                          # (50, T)
    sc2 = dyn2_ref[:, 0:1]                                   # (50, 1) BN2 scale
    sh2 = dyn2_ref[:, 1:2]                                   # (50, 1) BN2 shift
    w3 = p_ref[:, 30:31]                                     # (50, 1)
    b3 = p_ref[0:1, 31:32]                                   # (1, 1)
    h2 = jnp.maximum(h2 * sc2 + sh2, 0.0)                    # BN2 + ReLU
    o_ref[...] = jnp.sum(h2 * w3, axis=0, keepdims=True) + b3  # (1, T)


def pack_params(params):
    """Pack all static (torch-layout) parameters ONCE into a (50, 32) buffer.
    Call at init / whenever params change — NOT per forward call."""
    w1, b1, g1, be1, w2, b2, g2, be2, w3, b3 = params
    del b1, b2                      # dead under BatchNorm (mean-subtracted)
    P = jnp.zeros((F2, 32), jnp.float32)
    P = P.at[:, 0:F1].set(w2)            # (50, 25)
    P = P.at[0:F1, 25].set(w1[:, 0])
    P = P.at[0:F1, 26].set(g1)
    P = P.at[0:F1, 27].set(be1)
    P = P.at[:, 28].set(g2)
    P = P.at[:, 29].set(be2)
    P = P.at[:, 30].set(w3[0, :])
    P = P.at[0, 31].set(b3[0])
    return P


@functools.partial(jax.jit, static_argnames=("tile_n",))
def simple_regression_forward(x, packed, *, tile_n=None):
    """x: (N, 1) (or (N,) / (1, N)) float32 -> (N, 1) float32.
    `packed` is the pre-packed (50, 32) buffer from pack_params()."""
    n = x.size
    xf = x.reshape(-1).astype(jnp.float32)

    # ---- scalar batch stats of x: BN1 folds to a per-feature affine of x ----
    mean_x = jnp.mean(xf)
    var_x = jnp.var(xf)                                  # biased, matches BN
    w1 = packed[0:F1, 25]
    g1 = packed[0:F1, 26]
    be1 = packed[0:F1, 27]
    a1 = g1 * w1 * lax.rsqrt(w1 * w1 * var_x + EPS)      # exact: layer 1 affine
    c1 = be1 - a1 * mean_x
    dyn1 = jnp.stack([a1, c1], axis=1)                   # (25, 2)

    # ---- batch-on-lanes layout, padded to whole lane tiles ------------------
    # (tiny copy, fused into this jit; pass x as (1, N) with N % 128 == 0 to
    #  make it a pure bitcast)
    if tile_n is None:
        tile_n = min(MAX_TILE_N, _round_up(n, 128))
    tile_n = max(128, _round_up(tile_n, 128))
    n_pad = _round_up(n, tile_n)
    num_tiles = n_pad // tile_n
    x2 = jnp.pad(xf, (0, n_pad - n)).reshape(1, n_pad)

    resident = lambda i: (0, 0)        # constant index_map -> DMA'd once
    cp = pltpu.CompilerParams(dimension_semantics=("parallel",),
                              vmem_limit_bytes=VMEM_LIMIT)

    # ---- pass 1: per-tile partial BN2 statistics -----------------------------
    s_part, ss_part = pl.pallas_call(
        functools.partial(stats_kernel, valid_n=n),
        out_shape=(jax.ShapeDtypeStruct((num_tiles, F2, 1), jnp.float32),
                   jax.ShapeDtypeStruct((num_tiles, F2, 1), jnp.float32)),
        grid=(num_tiles,),
        in_specs=[pl.BlockSpec((1, tile_n), lambda i: (0, i)),
                  pl.BlockSpec((F2, 32), resident),
                  pl.BlockSpec((F1, 2), resident)],
        out_specs=(pl.BlockSpec((1, F2, 1), lambda i: (i, 0, 0)),
                   pl.BlockSpec((1, F2, 1), lambda i: (i, 0, 0))),
        compiler_params=cp,
    )(x2, packed, dyn1)

    # ---- combine partials (cross-tile AND cross-TensorCore safe) -------------
    sum2 = jnp.sum(s_part, axis=0)[:, 0]                 # (50,)
    sumsq2 = jnp.sum(ss_part, axis=0)[:, 0]
    mean2 = sum2 / n
    var2 = jnp.maximum(sumsq2 / n - mean2 * mean2, 0.0)  # single-pass, f32
    g2 = packed[:, 28]
    be2 = packed[:, 29]
    sc2 = g2 * lax.rsqrt(var2 + EPS)
    sh2 = be2 - mean2 * sc2
    dyn2 = jnp.stack([sc2, sh2], axis=1)                 # (50, 2)

    # ---- pass 2: recompute + BN2 apply + ReLU + layer 3 ----------------------
    out2 = pl.pallas_call(
        apply_kernel,
        out_shape=jax.ShapeDtypeStruct((1, n_pad), jnp.float32),
        grid=(num_tiles,),
        in_specs=[pl.BlockSpec((1, tile_n), lambda i: (0, i)),
                  pl.BlockSpec((F2, 32), resident),
                  pl.BlockSpec((F1, 2), resident),
                  pl.BlockSpec((F2, 2), resident)],
        out_specs=pl.BlockSpec((1, tile_n), lambda i: (0, i)),
        compiler_params=cp,
    )(x2, packed, dyn1, dyn2)

    # TODO(synk): for very small N a single fused (whole-batch-resident) call
    # would save one kernel launch; omitted to keep a single scalable path.
    return out2[0, :n].reshape(n, 1)


def init_params(key):
    """Torch-layout params: Linear weight (out, in), bias (out,); BN gamma=1, beta=0."""
    def linear(k, d_in, d_out):
        kw, kb = jax.random.split(k)
        bound = 1.0 / jnp.sqrt(jnp.float32(d_in))
        w = jax.random.uniform(kw, (d_out, d_in), jnp.float32, -bound, bound)
        b = jax.random.uniform(kb, (d_out,), jnp.float32, -bound, bound)
        return w, b

    k1, k2, k3 = jax.random.split(key, 3)
    w1, b1 = linear(k1, 1, F1)
    w2, b2 = linear(k2, F1, F2)
    w3, b3 = linear(k3, F2, 1)
    g1 = jnp.ones((F1,), jnp.float32); be1 = jnp.zeros((F1,), jnp.float32)
    g2 = jnp.ones((F2,), jnp.float32); be2 = jnp.zeros((F2,), jnp.float32)
    return (w1, b1, g1, be1, w2, b2, g2, be2, w3, b3)


def reference_forward(x, params, *, mxu_dtype=jnp.float32):
    """Pure-JAX mirror of the PyTorch module (biases included, batch statistics,
    track_running_stats=False).  mxu_dtype=jnp.bfloat16 mirrors the kernel's
    bf16 MXU operands for the 25->50 matmul (f32 accumulation) — the only
    deliberate deviation from the f32 torch forward."""
    w1, b1, g1, be1, w2, b2, g2, be2, w3, b3 = params

    def bn_relu(h, g, be):
        mean = jnp.mean(h, axis=0, keepdims=True)
        var = jnp.mean((h - mean) ** 2, axis=0, keepdims=True)   # biased var
        return jnp.maximum((h - mean) * lax.rsqrt(var + EPS) * g + be, 0.0)

    h = bn_relu(x @ w1.T + b1, g1, be1)
    h2 = jnp.dot(h.astype(mxu_dtype), w2.T.astype(mxu_dtype),
                 preferred_element_type=jnp.float32) + b2
    h = bn_relu(h2, g2, be2)
    return h @ w3.T + b3


if __name__ == "__main__":
    key = jax.random.PRNGKey(0)
    kx, kx2, kp = jax.random.split(key, 3)
    params = init_params(kp)
    packed = pack_params(params)          # packed ONCE, outside the forward

    # Small batch (single 128-lane tile, 120 masked pad lanes).
    x = jax.random.normal(kx, (8, 1), jnp.float32)
    out = jax.block_until_ready(simple_regression_forward(x, packed))
    ref = reference_forward(x, params, mxu_dtype=jnp.bfloat16)
    assert out.shape == (8, 1)
    assert jnp.allclose(out, ref, atol=2e-2, rtol=2e-2), "mismatch (batch=8)"

    # Multi-tile path: force a small tile so the grid + tail masking is hit.
    x_big = jax.random.normal(kx2, (300, 1), jnp.float32)
    out_big = jax.block_until_ready(
        simple_regression_forward(x_big, packed, tile_n=128))
    ref_big = reference_forward(x_big, params, mxu_dtype=jnp.bfloat16)
    assert out_big.shape == (300, 1)
    assert jnp.allclose(out_big, ref_big, atol=2e-2, rtol=2e-2), "mismatch (batch=300)"

    print("KERNEL_OK")
</pallas_src>

<mosaic_0001>
module attributes {stable_mosaic.version = 11 : i64} {
  func.func @stats_kernel(%arg0: i32, %arg1: memref<1x128xf32, #tpu.memory_space<vmem>>, %arg2: memref<50x32xf32, #tpu.memory_space<vmem>>, %arg3: memref<25x2xf32, #tpu.memory_space<vmem>>, %arg4: memref<1x50x1xf32, #tpu.memory_space<vmem>>, %arg5: memref<1x50x1xf32, #tpu.memory_space<vmem>>) attributes {dimension_semantics = [#tpu.dimension_semantics<parallel>], iteration_bounds = array<i64: 1>, scalar_prefetch = 0 : i64, scratch_operands = 0 : i64, tpu.core_type = #tpu.core_type<tc>, window_params = [{transform_indices = @transform_0, window_bounds = array<i64: 1, 128>}, {pipeline_mode = #tpu.pipeline_mode<synchronous>, transform_indices = @transform_1, window_bounds = array<i64: 50, 32>}, {pipeline_mode = #tpu.pipeline_mode<synchronous>, transform_indices = @transform_2, window_bounds = array<i64: 25, 2>}, {transform_indices = @transform_3, window_bounds = array<i64: 1, 50, 1>}, {transform_indices = @transform_4, window_bounds = array<i64: 1, 50, 1>}]} {
    %c0 = arith.constant 0 : index
    %c0_0 = arith.constant 0 : index
    %0 = vector.load %arg1[%c0, %c0_0] : memref<1x128xf32, #tpu.memory_space<vmem>>, vector<1x128xf32>
    %c0_1 = arith.constant 0 : index
    %c0_2 = arith.constant 0 : index
    %1 = vector.load %arg3[%c0_1, %c0_2] : memref<25x2xf32, #tpu.memory_space<vmem>>, vector<25x1xf32>
    %c0_3 = arith.constant 0 : index
    %c1 = arith.constant 1 : index
    %2 = vector.load %arg3[%c0_3, %c1] : memref<25x2xf32, #tpu.memory_space<vmem>>, vector<25x1xf32>
    %3 = vector.broadcast %1 : vector<25x1xf32> to vector<25x128xf32>
    %4 = vector.broadcast %0 : vector<1x128xf32> to vector<25x128xf32>
    %5 = arith.mulf %3, %4 : vector<25x128xf32>
    %6 = vector.broadcast %2 : vector<25x1xf32> to vector<25x128xf32>
    %7 = arith.addf %5, %6 : vector<25x128xf32>
    %cst = arith.constant 0.000000e+00 : f32
    %8 = vector.broadcast %cst : f32 to vector<25x128xf32>
    %9 = arith.maximumf %7, %8 : vector<25x128xf32>
    %c0_4 = arith.constant 0 : index
    %c0_5 = arith.constant 0 : index
    %10 = vector.load %arg2[%c0_4, %c0_5] : memref<50x32xf32, #tpu.memory_space<vmem>>, vector<50x25xf32>
    %11 = arith.truncf %10 : vector<50x25xf32> to vector<50x25xbf16>
    %12 = arith.truncf %9 : vector<25x128xf32> to vector<25x128xbf16>
    %cst_6 = arith.constant dense<0.000000e+00> : vector<50x128xf32>
    %13 = tpu.matmul %11, %12, %cst_6 {dimension_numbers = #tpu.dot_dimension_numbers<[1], [0], [0], [1], [0, 0, 1, 1], [], []>} : vector<50x25xbf16>, vector<25x128xbf16>, vector<50x128xf32> -> vector<50x128xf32>
    %14 = tpu.iota {dimensions = array<i32: 1>} : vector<1x128xi32>
    %c128_i32 = arith.constant 128 : i32
    %15 = arith.muli %arg0, %c128_i32 : i32
    %16 = vector.broadcast %15 : i32 to vector<1x128xi32>
    %17 = arith.addi %14, %16 : vector<1x128xi32>
    %c8_i32 = arith.constant 8 : i32
    %18 = vector.broadcast %c8_i32 : i32 to vector<1x128xi32>
    %19 = arith.cmpi slt, %17, %18 : vector<1x128xi32>
    %cst_7 = arith.constant 0.000000e+00 : f32
    %20 = vector.shape_cast %19 : vector<1x128xi1> to vector<1x128xi1>
    %21 = vector.broadcast %20 : vector<1x128xi1> to vector<50x128xi1>
    %22 = vector.broadcast %cst_7 : f32 to vector<50x128xf32>
    %23 = arith.select %21, %13, %22 : vector<50x128xi1>, vector<50x128xf32>
    %cst_8 = arith.constant dense<0.000000e+00> : vector<50xf32>
    %24 = vector.multi_reduction <add>, %23, %cst_8 [1] : vector<50x128xf32> to vector<50xf32>
    %25 = vector.shape_cast %24 : vector<50xf32> to vector<50x1xf32>
    %26 = vector.shape_cast %25 : vector<50x1xf32> to vector<1x50x1xf32>
    %c0_9 = arith.constant 0 : index
    %c0_10 = arith.constant 0 : index
    %c0_11 = arith.constant 0 : index
    %27 = vector.load %arg4[%c0_9, %c0_10, %c0_11] : memref<1x50x1xf32, #tpu.memory_space<vmem>>, vector<1x50x1xf32>
    tpu.vector_store %arg4[%c0_9, %c0_10, %c0_11], %26 {strides = array<i32>} : memref<1x50x1xf32, #tpu.memory_space<vmem>>, vector<1x50x1xf32>,
    %28 = arith.mulf %23, %23 : vector<50x128xf32>
    %cst_12 = arith.constant dense<0.000000e+00> : vector<50xf32>
    %29 = vector.multi_reduction <add>, %28, %cst_12 [1] : vector<50x128xf32> to vector<50xf32>
    %30 = vector.shape_cast %29 : vector<50xf32> to vector<50x1xf32>
    %31 = vector.shape_cast %30 : vector<50x1xf32> to vector<1x50x1xf32>
    %c0_13 = arith.constant 0 : index
    %c0_14 = arith.constant 0 : index
    %c0_15 = arith.constant 0 : index
    %32 = vector.load %arg5[%c0_13, %c0_14, %c0_15] : memref<1x50x1xf32, #tpu.memory_space<vmem>>, vector<1x50x1xf32>
    tpu.vector_store %arg5[%c0_13, %c0_14, %c0_15], %31 {strides = array<i32>} : memref<1x50x1xf32, #tpu.memory_space<vmem>>, vector<1x50x1xf32>,
    return
  }
  func.func @transform_0(%arg0: i32) -> (i32, i32) {
    %c0_i32 = arith.constant 0 : i32
    %c0_i32_0 = arith.constant 0 : i32
    return %c0_i32, %arg0 : i32, i32
  }
  func.func @transform_1(%arg0: i32) -> (i32, i32) {
    %c0_i32 = arith.constant 0 : i32
    %c0_i32_0 = arith.constant 0 : i32
    %c0_i32_1 = arith.constant 0 : i32
    return %c0_i32, %c0_i32_0 : i32, i32
  }
  func.func @transform_2(%arg0: i32) -> (i32, i32) {
    %c0_i32 = arith.constant 0 : i32
    %c0_i32_0 = arith.constant 0 : i32
    %c0_i32_1 = arith.constant 0 : i32
    return %c0_i32, %c0_i32_0 : i32, i32
  }
  func.func @transform_3(%arg0: i32) -> (i32, i32, i32) {
    %c0_i32 = arith.constant 0 : i32
    %c0_i32_0 = arith.constant 0 : i32
    %c0_i32_1 = arith.constant 0 : i32
    return %arg0, %c0_i32, %c0_i32_0 : i32, i32, i32
  }
  func.func @transform_4(%arg0: i32) -> (i32, i32, i32) {
    %c0_i32 = arith.constant 0 : i32
    %c0_i32_0 = arith.constant 0 : i32
    %c0_i32_1 = arith.constant 0 : i32
    return %arg0, %c0_i32, %c0_i32_0 : i32, i32, i32
  }
}

module attributes {stable_mosaic.version = 11 : i64} {
  func.func @apply_kernel(%arg0: i32, %arg1: memref<1x128xf32, #tpu.memory_space<vmem>>, %arg2: memref<50x32xf32, #tpu.memory_space<vmem>>, %arg3: memref<25x2xf32, #tpu.memory_space<vmem>>, %arg4: memref<50x2xf32, #tpu.memory_space<vmem>>, %arg5: memref<1x128xf32, #tpu.memory_space<vmem>>) attributes {dimension_semantics = [#tpu.dimension_semantics<parallel>], iteration_bounds = array<i64: 1>, scalar_prefetch = 0 : i64, scratch_operands = 0 : i64, tpu.core_type = #tpu.core_type<tc>, window_params = [{transform_indices = @transform_0, window_bounds = array<i64: 1, 128>}, {pipeline_mode = #tpu.pipeline_mode<synchronous>, transform_indices = @transform_1, window_bounds = array<i64: 50, 32>}, {pipeline_mode = #tpu.pipeline_mode<synchronous>, transform_indices = @transform_2, window_bounds = array<i64: 25, 2>}, {pipeline_mode = #tpu.pipeline_mode<synchronous>, transform_indices = @transform_3, window_bounds = array<i64: 50, 2>}, {transform_indices = @transform_4, window_bounds = array<i64: 1, 128>}]} {
    %c0 = arith.constant 0 : index
    %c0_0 = arith.constant 0 : index
    %0 = vector.load %arg1[%c0, %c0_0] : memref<1x128xf32, #tpu.memory_space<vmem>>, vector<1x128xf32>
    %c0_1 = arith.constant 0 : index
    %c0_2 = arith.constant 0 : index
    %1 = vector.load %arg3[%c0_1, %c0_2] : memref<25x2xf32, #tpu.memory_space<vmem>>, vector<25x1xf32>
    %c0_3 = arith.constant 0 : index
    %c1 = arith.constant 1 : index
    %2 = vector.load %arg3[%c0_3, %c1] : memref<25x2xf32, #tpu.memory_space<vmem>>, vector<25x1xf32>
    %3 = vector.broadcast %1 : vector<25x1xf32> to vector<25x128xf32>
    %4 = vector.broadcast %0 : vector<1x128xf32> to vector<25x128xf32>
    %5 = arith.mulf %3, %4 : vector<25x128xf32>
    %6 = vector.broadcast %2 : vector<25x1xf32> to vector<25x128xf32>
    %7 = arith.addf %5, %6 : vector<25x128xf32>
    %cst = arith.constant 0.000000e+00 : f32
    %8 = vector.broadcast %cst : f32 to vector<25x128xf32>
    %9 = arith.maximumf %7, %8 : vector<25x128xf32>
    %c0_4 = arith.constant 0 : index
    %c0_5 = arith.constant 0 : index
    %10 = vector.load %arg2[%c0_4, %c0_5] : memref<50x32xf32, #tpu.memory_space<vmem>>, vector<50x25xf32>
    %11 = arith.truncf %10 : vector<50x25xf32> to vector<50x25xbf16>
    %12 = arith.truncf %9 : vector<25x128xf32> to vector<25x128xbf16>
    %cst_6 = arith.constant dense<0.000000e+00> : vector<50x128xf32>
    %13 = tpu.matmul %11, %12, %cst_6 {dimension_numbers = #tpu.dot_dimension_numbers<[1], [0], [0], [1], [0, 0, 1, 1], [], []>} : vector<50x25xbf16>, vector<25x128xbf16>, vector<50x128xf32> -> vector<50x128xf32>
    %c0_7 = arith.constant 0 : index
    %c0_8 = arith.constant 0 : index
    %14 = vector.load %arg4[%c0_7, %c0_8] : memref<50x2xf32, #tpu.memory_space<vmem>>, vector<50x1xf32>
    %c0_9 = arith.constant 0 : index
    %c1_10 = arith.constant 1 : index
    %15 = vector.load %arg4[%c0_9, %c1_10] : memref<50x2xf32, #tpu.memory_space<vmem>>, vector<50x1xf32>
    %c0_11 = arith.constant 0 : index
    %c30 = arith.constant 30 : index
    %16 = vector.load %arg2[%c0_11, %c30] : memref<50x32xf32, #tpu.memory_space<vmem>>, vector<50x1xf32>
    %c0_12 = arith.constant 0 : index
    %c31 = arith.constant 31 : index
    %17 = vector.load %arg2[%c0_12, %c31] : memref<50x32xf32, #tpu.memory_space<vmem>>, vector<1x1xf32>
    %18 = vector.broadcast %14 : vector<50x1xf32> to vector<50x128xf32>
    %19 = arith.mulf %13, %18 : vector<50x128xf32>
    %20 = vector.broadcast %15 : vector<50x1xf32> to vector<50x128xf32>
    %21 = arith.addf %19, %20 : vector<50x128xf32>
    %cst_13 = arith.constant 0.000000e+00 : f32
    %22 = vector.broadcast %cst_13 : f32 to vector<50x128xf32>
    %23 = arith.maximumf %21, %22 : vector<50x128xf32>
    %24 = vector.broadcast %16 : vector<50x1xf32> to vector<50x128xf32>
    %25 = arith.mulf %23, %24 : vector<50x128xf32>
    %cst_14 = arith.constant dense<0.000000e+00> : vector<128xf32>
    %26 = vector.multi_reduction <add>, %25, %cst_14 [0] : vector<50x128xf32> to vector<128xf32>
    %27 = vector.shape_cast %26 : vector<128xf32> to vector<1x128xf32>
    %28 = vector.broadcast %17 : vector<1x1xf32> to vector<1x128xf32>
    %29 = arith.addf %27, %28 : vector<1x128xf32>
    %c0_15 = arith.constant 0 : index
    %c0_16 = arith.constant 0 : index
    %30 = vector.load %arg5[%c0_15, %c0_16] : memref<1x128xf32, #tpu.memory_space<vmem>>, vector<1x128xf32>
    tpu.vector_store %arg5[%c0_15, %c0_16], %29 {strides = array<i32>} : memref<1x128xf32, #tpu.memory_space<vmem>>, vector<1x128xf32>,
    return
  }
  func.func @transform_0(%arg0: i32) -> (i32, i32) {
    %c0_i32 = arith.constant 0 : i32
    %c0_i32_0 = arith.constant 0 : i32
    return %c0_i32, %arg0 : i32, i32
  }
  func.func @transform_1(%arg0: i32) -> (i32, i32) {
    %c0_i32 = arith.constant 0 : i32
    %c0_i32_0 = arith.constant 0 : i32
    %c0_i32_1 = arith.constant 0 : i32
    return %c0_i32, %c0_i32_0 : i32, i32
  }
  func.func @transform_2(%arg0: i32) -> (i32, i32) {
    %c0_i32 = arith.constant 0 : i32
    %c0_i32_0 = arith.constant 0 : i32
    %c0_i32_1 = arith.constant 0 : i32
    return %c0_i32, %c0_i32_0 : i32, i32
  }
  func.func @transform_3(%arg0: i32) -> (i32, i32) {
    %c0_i32 = arith.constant 0 : i32
    %c0_i32_0 = arith.constant 0 : i32
    %c0_i32_1 = arith.constant 0 : i32
    return %c0_i32, %c0_i32_0 : i32, i32
  }
  func.func @transform_4(%arg0: i32) -> (i32, i32) {
    %c0_i32 = arith.constant 0 : i32
    %c0_i32_0 = arith.constant 0 : i32
    return %c0_i32, %arg0 : i32, i32
  }
}

</mosaic_0001>

<bundles_post_ra>
// kernel: simple_regression_forward.2
= control target key start
LH: loop header
LB: loop body
LE: loop exit
PB: predicated region body
PF: predicated region fallthrough
CT: control target
= control target key end

     0   :  { %v284_v0 = vmov 0   ;;  %v285_v5 = vmov 1   ;;  %vm89_vm0 = vcmask 203776   ;;  %vm102_vm1 = vcmask 1043456   ;;  %s417_s2 = inlined_call_operand.vmem [shape: f32[25,2], index: 2, kind: input, shape index: {}]   ;;  %s418_s1 = inlined_call_operand.vmem [shape: f32[50,32], index: 1, kind: input, shape index: {}]   ;;  %s419_s0 = inlined_call_operand.vmem [shape: f32[1,128], index: 0, kind: input, shape index: {}]   ;;  %s420_s3 = inlined_call_operand.vmem [shape: f32[1,50,1], index: 3, kind: output, shape index: {0}]   ;;  %s421_s4 = inlined_call_operand.vmem [shape: f32[1,50,1], index: 4, kind: output, shape index: {1}]  }
   0x1   :  { %281 = vset.pattern.permute.xlu1 %v284_v0  ;;  %280 = vset.pattern.permute.xlu0 %v284_v0  ;;  %v20_v1 = vld [vmem:[%s417_s2 + $0x10] sm:$0xff]  ;;  %v18_v2 = vld [vmem:[%s417_s2] sm:$0xff]  ;;  %v21_v3 = vld [vmem:[%s417_s2 + $0x18] sm:$0x1]  ;;  %vm103_vm2 = vcmask 1044480   ;;  %v286_v31 = vmov 65535   ;;  %v173_v44 = vlaneseq }
   0x2   :  { %34 = vperm.xlu1 %281, %v20_v1   ;;  %24 = vperm.xlu0 %280, %v18_v2   ;;  %v19_v4 = vld [vmem:[%s417_s2 + $0x8] sm:$0xff]  ;;  %v76_v6 = vld [vmem:[%s418_s1] sm:$0xff]  ;;  %v104_v32 = vsel %vm102_vm1, 4294967295, %v286_v31  ;;  %v78_v38 = vld [vmem:[%s418_s1 + $0x10] sm:$0xff]  ;;  %vm200_vm4 = vcmask 1041408   ;;  %vm204_vm5 = vcmask 7168  }
   0x3   :  { %v77_v7 = vld [vmem:[%s418_s1 + $0x8] sm:$0xff]  ;;  %v80_v9 = vld [vmem:[%s418_s1 + $0x20] sm:$0xff]  ;;  %v105_v36 = vsel %vm103_vm2, %v104_v32, 0  ;;  %v79_v39 = vld [vmem:[%s418_s1 + $0x18] sm:$0xff]  ;;  %v174_v45 = vand.u32 127, %v173_v44  ;;  %vm211_vm6 = vcmask 1024  }
   0x4   :  { %v83_v8 = vpack.c.bf16 %v77_v7, %v76_v6  ;;  %v81_v10 = vld [vmem:[%s418_s1 + $0x28] sm:$0xff]  ;;  %v250_v16 = vld [vmem:[%s419_s0] ss:$0 sm:$0xff]  ;;  %v82_v40 = vld [vmem:[%s418_s1 + $0x30] sm:$0x3]  ;;  %v84_v42 = vpack.c.bf16 %v79_v39, %v78_v38 }
   0x5   :  { %v85_v11 = vpack.c.bf16 %v81_v10, %v80_v9  ;;  %v86_v43 = vpack.c.bf16 %v82_v40, %v82_v40  ;;  %vm178_vm3 = vcmp.lt.s32.totalorder %v174_v45, 8 }
   0x6   :  { %39 = vperm.xlu1 %281, %v21_v3   ;;  %29 = vperm.xlu0 %280, %v19_v4  }
   0x7   :  { %265 = vmatprep.mubr.msk.bf16.mxu0 %vm89_vm0, %v83_v8  ;;  %269 = vmatprep.mubr.msk.bf16.mxu1 %vm89_vm0, %v85_v11 }
   0xa   :  { %283 = vset.pattern.permute.xlu1 %v285_v5  ;;  %282 = vset.pattern.permute.xlu0 %v285_v5 }
   0xb   :  { %57 = vperm.xlu1 %283, %v19_v4   ;;  %53 = vperm.xlu0 %282, %v18_v2  }
   0xf   :  { %61 = vperm.xlu1 %283, %v20_v1   ;;  %65 = vperm.xlu0 %282, %v21_v3  }
  0x81   :  { %v35_v12 = vpop.permute.xlu1 %34  ;;  %v25_v13 = vpop.permute.xlu0 %24 }
  0x82   :  { %v48_v17 = vmul.f32 %v250_v16, %v25_v13  ;;  %v50_v23 = vmul.f32 %v250_v16, %v35_v12 }
  0x85   :  { %v40_v14 = vpop.permute.xlu1 %39  ;;  %v30_v15 = vpop.permute.xlu0 %29 }
  0x86   :  { %v49_v18 = vmul.f32 %v250_v16, %v30_v15  ;;  %v51_v24 = vmul.f32 %v250_v16, %v40_v14 }
  0x8a   :  { %v58_v19 = vpop.permute.xlu1 %57  ;;  %v54_v20 = vpop.permute.xlu0 %53 }
  0x8b   :  { %v69_v21 = vadd.f32 %v58_v19, %v49_v18  ;;  %v68_v22 = vadd.f32 %v54_v20, %v48_v17 }
  0x8d   :  { %v73_v25 = vmax.f32 %v69_v21, 0.0  ;;  %v72_v26 = vmax.f32 %v68_v22, 0.0 }
  0x8e   :  { %v62_v27 = vpop.permute.xlu1 %61  ;;  %v66_v28 = vpop.permute.xlu0 %65 }
  0x8f   :  { %v87_v29 = vpack.c.bf16 %v73_v25, %v72_v26  ;;  %v70_v30 = vadd.f32 %v62_v27, %v50_v23  ;;  %v71_v33 = vadd.f32 %v66_v28, %v51_v24 }
  0x91   :  { %v74_v34 = vmax.f32 %v70_v30, 0.0  ;;  %v75_v35 = vmax.f32 %v71_v33, 0.0  ;;  %261 = vmatprep.subr.bf16.mxu0 %v87_v29  ;;  %273 = vmatprep.subr.bf16.mxu1 %v87_v29 }
  0x92   :  { %262 = vmatpush3.bf16.msra.mxu0 %v87_v29  ;;  %275 = vmatpush3.bf16.msra.mxu1 %v87_v29 }
  0x93   :  { %v88_v37 = vpack.c.bf16 %v75_v35, %v74_v34 }
  0x95   :  { %v107_v41 = vand.u32 %v105_v36, %v88_v37 }
  0x97   :  { %263 = vmatprep.subr.bf16.mxu0 %v107_v41  ;;  %274 = vmatprep.subr.bf16.mxu1 %v107_v41 }
  0x98   :  { %264 = vmatpush3.bf16.msra.mxu0 %v107_v41  ;;  %276 = vmatpush3.bf16.msra.mxu1 %v107_v41 }
  0x9b   :  { %266 = vmatmul.mubr.msk.bf16.vlgmr.msra.gmra.mrb[0].mxu0 %vm89_vm0, %v84_v42  ;;  %270 = vmatmul.mubr.msk.bf16.vlgmr.msra.gmra.mrb[0].mxu1 %vm89_vm0, %v86_v43 }
 0x16e   :  { %v267_v46 = vpop.f32.mrb[0].mxu0  ;;  %v271_v47 = vpop.f32.mrb[0].mxu1 }
 0x16f   :  { %v143_v48 = vpop.f32.mrb[1].mxu0  ;;  %v159_v49 = vpop.f32.mrb[1].mxu1  ;;  %v183_v50 = vsel %vm178_vm3, %v267_v46, 0.0  ;;  %v187_v57 = vsel %vm178_vm3, %v271_v47, 0.0 }
 0x170   :  { %192 = vadd.xlane.f32.xlu0 %v183_v50  ;;  %v268_v51 = vpop.f32.mrb[2].mxu0  ;;  %v272_v52 = vpop.f32.mrb[2].mxu1  ;;  %v181_v53 = vsel %vm178_vm3, %v143_v48, 0.0  ;;  %v185_v56 = vsel %vm178_vm3, %v159_v49, 0.0  ;;  %v201_v59 = vsel %vm200_vm4, %v187_v57, 0.0  ;;  %v215_v60 = vmul.f32 %v183_v50, %v183_v50 }
 0x171   :  { %188 = vadd.xlane.f32.xlu1 %v181_v53  ;;  %v146_v54 = vpop.f32.mrb[3].mxu0  ;;  %v162_v55 = vpop.f32.mrb[3].mxu1  ;;  %v184_v58 = vsel %vm178_vm3, %v268_v51, 0.0  ;;  %v213_v0 = vmul.f32 %v181_v53, %v181_v53  ;;  %v217_v2 = vmul.f32 %v185_v56, %v185_v56  ;;  %v219_v3 = vmul.f32 %v187_v57, %v187_v57 }
 0x172   :  { %v182_v61 = vsel %vm178_vm3, %v146_v54, 0.0  ;;  %v186_v62 = vsel %vm178_vm3, %v162_v55, 0.0  ;;  %v216_v63 = vmul.f32 %v184_v58, %v184_v58 }
 0x173   :  { %v214_v1 = vmul.f32 %v182_v61, %v182_v61  ;;  %v218_v4 = vmul.f32 %v186_v62, %v186_v62  ;;  %v232_v5 = vsel %vm200_vm4, %v219_v3, 0.0 }
 0x174   :  { %196 = vadd.xlane.f32.xlu0 %v185_v56 }
 0x175   :  { %194 = vadd.xlane.f32.xlu1 %v184_v58 }
 0x178   :  { %202 = vadd.xlane.f32.xlu0 %v201_v59 }
 0x179   :  { %224 = vadd.xlane.f32.xlu1 %v215_v60 }
 0x17c   :  { %190 = vadd.xlane.f32.xlu0 %v182_v61 }
 0x17d   :  { %198 = vadd.xlane.f32.xlu1 %v186_v62 }
 0x180   :  { %226 = vadd.xlane.f32.xlu0 %v216_v63 }
 0x181   :  { %220 = vadd.xlane.f32.xlu1 %v213_v0 }
 0x184   :  { %222 = vadd.xlane.f32.xlu0 %v214_v1 }
 0x185   :  { %228 = vadd.xlane.f32.xlu1 %v217_v2 }
 0x188   :  { %230 = vadd.xlane.f32.xlu0 %v218_v4 }
 0x189   :  { %233 = vadd.xlane.f32.xlu1 %v232_v5 }
 0x1fd   :  { %v193_v6 = vpop.xlane.xlu0 %192 }
 0x1fe   :  { %207 = vst.msk [vmem:[%s420_s3 + $0x10] sm:$0xff] %vm204_vm5, %v193_v6  ;;  %v189_v7 = vpop.xlane.xlu1 %188 }
 0x1ff   :  { %205 = vst.msk [vmem:[%s420_s3] sm:$0xff] %vm204_vm5, %v189_v7 }
 0x201   :  { %v197_v8 = vpop.xlane.xlu0 %196 }
 0x202   :  { %209 = vst.msk [vmem:[%s420_s3 + $0x20] sm:$0xff] %vm204_vm5, %v197_v8  ;;  %v195_v9 = vpop.xlane.xlu1 %194 }
 0x203   :  { %208 = vst.msk [vmem:[%s420_s3 + $0x18] sm:$0xff] %vm204_vm5, %v195_v9 }
 0x205   :  { %v203_v10 = vpop.xlane.xlu0 %202 }
 0x206   :  { %212 = vst.msk [vmem:[%s420_s3 + $0x30] sm:$0x3] %vm211_vm6, %v203_v10  ;;  %v225_v11 = vpop.xlane.xlu1 %224 }
 0x207   :  { %237 = vst.msk [vmem:[%s421_s4 + $0x10] sm:$0xff] %vm204_vm5, %v225_v11 }
 0x209   :  { %v191_v12 = vpop.xlane.xlu0 %190 }
 0x20a   :  { %206 = vst.msk [vmem:[%s420_s3 + $0x8] sm:$0xff] %vm204_vm5, %v191_v12  ;;  %v199_v13 = vpop.xlane.xlu1 %198 }
 0x20b   :  { %210 = vst.msk [vmem:[%s420_s3 + $0x28] sm:$0xff] %vm204_vm5, %v199_v13 }
 0x20d   :  { %v227_v14 = vpop.xlane.xlu0 %226 }
 0x20e   :  { %238 = vst.msk [vmem:[%s421_s4 + $0x18] sm:$0xff] %vm204_vm5, %v227_v14  ;;  %v221_v15 = vpop.xlane.xlu1 %220 }
 0x20f   :  { %235 = vst.msk [vmem:[%s421_s4] sm:$0xff] %vm204_vm5, %v221_v15 }
 0x211   :  { %v223_v16 = vpop.xlane.xlu0 %222 }
 0x212   :  { %236 = vst.msk [vmem:[%s421_s4 + $0x8] sm:$0xff] %vm204_vm5, %v223_v16  ;;  %v229_v17 = vpop.xlane.xlu1 %228 }
 0x213   :  { %239 = vst.msk [vmem:[%s421_s4 + $0x20] sm:$0xff] %vm204_vm5, %v229_v17 }
 0x215   :  { %v231_v18 = vpop.xlane.xlu0 %230 }
 0x216   :  { %240 = vst.msk [vmem:[%s421_s4 + $0x28] sm:$0xff] %vm204_vm5, %v231_v18  ;;  %v234_v19 = vpop.xlane.xlu1 %233 }
 0x217   :  { %241 = vst.msk [vmem:[%s421_s4 + $0x30] sm:$0x3] %vm211_vm6, %v234_v19 }

// kernel: simple_regression_forward.3
= control target key start
LH: loop header
LB: loop body
LE: loop exit
PB: predicated region body
PF: predicated region fallthrough
CT: control target
= control target key end

     0   :  { %v384_v0 = vmov 0   ;;  %v385_v5 = vmov 1   ;;  %vm90_vm0 = vcmask 203776   ;;  %v386_v21 = vmov 30   ;;  %s499_s2 = inlined_call_operand.vmem [shape: f32[25,2], index: 2, kind: input, shape index: {}]   ;;  %s500_s1 = inlined_call_operand.vmem [shape: f32[50,32], index: 1, kind: input, shape index: {}]   ;;  %s501_s3 = inlined_call_operand.vmem [shape: f32[50,2], index: 3, kind: input, shape index: {}]   ;;  %s502_s0 = inlined_call_operand.vmem [shape: f32[1,128], index: 0, kind: input, shape index: {}]   ;;  %s503_s4 = inlined_call_operand.vmem [shape: f32[1,128], index: 4, kind: output, shape index: {}]  }
   0x1   :  { %366 = vset.pattern.permute.xlu1 %v384_v0  ;;  %365 = vset.pattern.permute.xlu0 %v384_v0  ;;  %v21_v1 = vld [vmem:[%s499_s2 + $0x10] sm:$0xff]  ;;  %v19_v2 = vld [vmem:[%s499_s2] sm:$0xff]  ;;  %v22_v3 = vld [vmem:[%s499_s2 + $0x18] sm:$0x1]  ;;  %v387_v23 = vmov 31   ;;  %vm103_vm1 = vcmask 1043456  }
   0x2   :  { %35 = vperm.xlu1 %366, %v21_v1   ;;  %25 = vperm.xlu0 %365, %v19_v2   ;;  %v20_v4 = vld [vmem:[%s499_s2 + $0x8] sm:$0xff]  ;;  %v77_v6 = vld [vmem:[%s500_s1] sm:$0xff]  ;;  %v445_v11 = vld [vmem:[%s500_s1 + $0x10] sm:$0xff]  ;;  %vm104_vm2 = vcmask 1044480   ;;  %v388_v45 = vmov 65535   ;;  %vm313_vm3 = vcmask 1041408  }
   0x3   :  { %v78_v7 = vld [vmem:[%s500_s1 + $0x8] sm:$0xff]  ;;  %v81_v8 = vld [vmem:[%s500_s1 + $0x20] sm:$0xff]  ;;  %v450_v12 = vld [vmem:[%s500_s1 + $0x18] sm:$0xff]  ;;  %v105_v46 = vsel %vm103_vm1, 4294967295, %v388_v45 }
   0x4   :  { %v84_v9 = vpack.c.bf16 %v78_v7, %v77_v6  ;;  %v82_v10 = vld [vmem:[%s500_s1 + $0x28] sm:$0xff]  ;;  %v85_v14 = vpack.c.bf16 %v450_v12, %v445_v11  ;;  %v174_v15 = vld [vmem:[%s501_s3] sm:$0xff]  ;;  %v176_v17 = vld [vmem:[%s501_s3 + $0x10] sm:$0xff]  ;;  %v106_v50 = vsel %vm104_vm2, %v105_v46, 0 }
   0x5   :  { %v86_v13 = vpack.c.bf16 %v82_v10, %v81_v8  ;;  %v175_v16 = vld [vmem:[%s501_s3 + $0x8] sm:$0xff]  ;;  %v178_v18 = vld [vmem:[%s501_s3 + $0x20] sm:$0xff]  ;;  %v177_v19 = vld [vmem:[%s501_s3 + $0x18] sm:$0xff] }
   0x6   :  { %40 = vperm.xlu1 %366, %v22_v3   ;;  %30 = vperm.xlu0 %365, %v20_v4   ;;  %v179_v20 = vld [vmem:[%s501_s3 + $0x28] sm:$0xff]  ;;  %v181_v22 = vld [vmem:[%s500_s1] sm:$0x1]  ;;  %v180_v24 = vld [vmem:[%s501_s3 + $0x30] sm:$0x3] }
   0x7   :  { %348 = vmatprep.mubr.msk.bf16.mxu0 %vm90_vm0, %v84_v9  ;;  %352 = vmatprep.mubr.msk.bf16.mxu1 %vm90_vm0, %v86_v13  ;;  %v83_v25 = vld [vmem:[%s500_s1 + $0x30] sm:$0x3]  ;;  %v333_v30 = vld [vmem:[%s502_s0] ss:$0 sm:$0xff] }
   0x8   :  { %v87_v53 = vpack.c.bf16 %v83_v25, %v83_v25 }
   0xa   :  { %368 = vset.pattern.permute.xlu1 %v385_v5  ;;  %367 = vset.pattern.permute.xlu0 %v385_v5 }
   0xb   :  { %58 = vperm.xlu1 %368, %v20_v4   ;;  %54 = vperm.xlu0 %367, %v19_v2  }
   0xf   :  { %62 = vperm.xlu1 %368, %v21_v1   ;;  %66 = vperm.xlu0 %367, %v22_v3  }
  0x13   :  { %369 = vset.pattern.permute.xlu1 %v384_v0  ;;  %370 = vset.pattern.permute.xlu0 %v384_v0 }
  0x14   :  { %184 = vperm.xlu1 %369, %v174_v15   ;;  %189 = vperm.xlu0 %370, %v175_v16  }
  0x18   :  { %194 = vperm.xlu1 %369, %v176_v17   ;;  %204 = vperm.xlu0 %370, %v178_v18  }
  0x1c   :  { %371 = vset.pattern.permute.xlu1 %v385_v5  ;;  %374 = vset.pattern.permute.xlu0 %v385_v5 }
  0x1d   :  { %225 = vperm.xlu1 %371, %v174_v15   ;;  %229 = vperm.xlu0 %374, %v175_v16  }
  0x21   :  { %372 = vset.pattern.permute.xlu1 %v384_v0  ;;  %245 = vperm.xlu0 %374, %v179_v20  }
  0x22   :  { %199 = vperm.xlu1 %372, %v177_v19  }
  0x25   :  { %379 = vset.pattern.permute.xlu0 %v386_v21 }
  0x26   :  { %373 = vset.pattern.permute.xlu1 %v385_v5  ;;  %273 = vperm.xlu0 %379, %v78_v7  }
  0x27   :  { %233 = vperm.xlu1 %373, %v176_v17  }
  0x2a   :  { %278 = vperm.xlu0 %379, %v445_v11  }
  0x2b   :  { %237 = vperm.xlu1 %373, %v177_v19  }
  0x2e   :  { %288 = vperm.xlu0 %379, %v81_v8  }
  0x2f   :  { %375 = vset.pattern.permute.xlu1 %v386_v21 }
  0x30   :  { %268 = vperm.xlu1 %375, %v77_v6  }
  0x32   :  { %383 = vset.pattern.permute.xlu0 %v387_v23 }
  0x33   :  { %324 = vperm.xlu0 %383, %v181_v22  }
  0x34   :  { %376 = vset.pattern.permute.xlu1 %v384_v0 }
  0x35   :  { %209 = vperm.xlu1 %376, %v179_v20  }
  0x39   :  { %377 = vset.pattern.permute.xlu1 %v385_v5 }
  0x3a   :  { %241 = vperm.xlu1 %377, %v178_v18  }
  0x3e   :  { %378 = vset.pattern.permute.xlu1 %v384_v0 }
  0x3f   :  { %214 = vperm.xlu1 %378, %v180_v24  }
  0x43   :  { %380 = vset.pattern.permute.xlu1 %v386_v21 }
  0x44   :  { %283 = vperm.xlu1 %380, %v450_v12  }
  0x48   :  { %381 = vset.pattern.permute.xlu1 %v385_v5 }
  0x49   :  { %249 = vperm.xlu1 %381, %v180_v24  }
  0x4d   :  { %382 = vset.pattern.permute.xlu1 %v386_v21 }
  0x4e   :  { %293 = vperm.xlu1 %382, %v82_v10  }
  0x52   :  { %298 = vperm.xlu1 %382, %v83_v25  }
  0x81   :  { %v36_v26 = vpop.permute.xlu1 %35  ;;  %v26_v27 = vpop.permute.xlu0 %25 }
  0x82   :  { %v49_v31 = vmul.f32 %v333_v30, %v26_v27  ;;  %v51_v37 = vmul.f32 %v333_v30, %v36_v26 }
  0x85   :  { %v41_v28 = vpop.permute.xlu1 %40  ;;  %v31_v29 = vpop.permute.xlu0 %30 }
  0x86   :  { %v50_v32 = vmul.f32 %v333_v30, %v31_v29  ;;  %v52_v38 = vmul.f32 %v333_v30, %v41_v28 }
  0x8a   :  { %v59_v33 = vpop.permute.xlu1 %58  ;;  %v55_v34 = vpop.permute.xlu0 %54 }
  0x8b   :  { %v70_v35 = vadd.f32 %v59_v33, %v50_v32  ;;  %v69_v36 = vadd.f32 %v55_v34, %v49_v31 }
  0x8d   :  { %v74_v39 = vmax.f32 %v70_v35, 0.0  ;;  %v73_v40 = vmax.f32 %v69_v36, 0.0 }
  0x8e   :  { %v63_v41 = vpop.permute.xlu1 %62  ;;  %v67_v42 = vpop.permute.xlu0 %66 }
  0x8f   :  { %v88_v43 = vpack.c.bf16 %v74_v39, %v73_v40  ;;  %v71_v44 = vadd.f32 %v63_v41, %v51_v37  ;;  %v72_v47 = vadd.f32 %v67_v42, %v52_v38 }
  0x91   :  { %v75_v48 = vmax.f32 %v71_v44, 0.0  ;;  %v76_v49 = vmax.f32 %v72_v47, 0.0  ;;  %344 = vmatprep.subr.bf16.mxu0 %v88_v43  ;;  %356 = vmatprep.subr.bf16.mxu1 %v88_v43 }
  0x92   :  { %345 = vmatpush3.bf16.msra.mxu0 %v88_v43  ;;  %358 = vmatpush3.bf16.msra.mxu1 %v88_v43 }
  0x93   :  { %v89_v51 = vpack.c.bf16 %v76_v49, %v75_v48  ;;  %v185_v54 = vpop.permute.xlu1 %184  ;;  %v190_v62 = vpop.permute.xlu0 %189 }
  0x95   :  { %v108_v52 = vand.u32 %v106_v50, %v89_v51 }
  0x97   :  { %346 = vmatprep.subr.bf16.mxu0 %v108_v52  ;;  %357 = vmatprep.subr.bf16.mxu1 %v108_v52  ;;  %v195_v55 = vpop.permute.xlu1 %194  ;;  %v205_v0 = vpop.permute.xlu0 %204 }
  0x98   :  { %347 = vmatpush3.bf16.msra.mxu0 %v108_v52  ;;  %359 = vmatpush3.bf16.msra.mxu1 %v108_v52 }
  0x9b   :  { %349 = vmatmul.mubr.msk.bf16.vlgmr.msra.gmra.mrb[0].mxu0 %vm90_vm0, %v85_v14  ;;  %353 = vmatmul.mubr.msk.bf16.vlgmr.msra.gmra.mrb[0].mxu1 %vm90_vm0, %v87_v53 }
  0x9c   :  { %v226_v56 = vpop.permute.xlu1 %225  ;;  %v230_v2 = vpop.permute.xlu0 %229 }
  0xa0   :  { %v246_v4 = vpop.permute.xlu0 %245 }
  0xa1   :  { %v200_v57 = vpop.permute.xlu1 %199 }
  0xa5   :  { %v274_v6 = vpop.permute.xlu0 %273 }
  0xa6   :  { %v234_v58 = vpop.permute.xlu1 %233 }
  0xa9   :  { %v279_v27 = vpop.permute.xlu0 %278 }
  0xaa   :  { %v238_v59 = vpop.permute.xlu1 %237 }
  0xad   :  { %v289_v41 = vpop.permute.xlu0 %288 }
  0xaf   :  { %v269_v60 = vpop.permute.xlu1 %268 }
  0xb4   :  { %v210_v61 = vpop.permute.xlu1 %209 }
  0xb9   :  { %v242_v63 = vpop.permute.xlu1 %241 }
  0xbe   :  { %v215_v1 = vpop.permute.xlu1 %214 }
  0xc3   :  { %v284_v3 = vpop.permute.xlu1 %283 }
  0xc8   :  { %v250_v5 = vpop.permute.xlu1 %249 }
  0xcd   :  { %v294_v29 = vpop.permute.xlu1 %293 }
  0xd1   :  { %v299_v44 = vpop.permute.xlu1 %298 }
 0x16e   :  { %v350_v7 = vpop.f32.mrb[0].mxu0  ;;  %v354_v8 = vpop.f32.mrb[0].mxu1 }
 0x16f   :  { %v219_v9 = vmul.f32 %v350_v7, %v195_v55  ;;  %v144_v10 = vpop.f32.mrb[1].mxu0  ;;  %v160_v11 = vpop.f32.mrb[1].mxu1  ;;  %v223_v22 = vmul.f32 %v354_v8, %v215_v1 }
 0x170   :  { %v217_v12 = vmul.f32 %v185_v54, %v144_v10  ;;  %v351_v13 = vpop.f32.mrb[2].mxu0  ;;  %v355_v14 = vpop.f32.mrb[2].mxu1  ;;  %v221_v20 = vmul.f32 %v205_v0, %v160_v11 }
 0x171   :  { %v220_v15 = vmul.f32 %v351_v13, %v200_v57  ;;  %v147_v16 = vpop.f32.mrb[3].mxu0  ;;  %v163_v17 = vpop.f32.mrb[3].mxu1  ;;  %v254_v18 = vadd.f32 %v234_v58, %v219_v9  ;;  %v258_v32 = vadd.f32 %v250_v5, %v223_v22 }
 0x172   :  { %v252_v19 = vadd.f32 %v226_v56, %v217_v12  ;;  %v218_v21 = vmul.f32 %v190_v62, %v147_v16  ;;  %v222_v26 = vmul.f32 %v210_v61, %v163_v17  ;;  %v256_v28 = vadd.f32 %v242_v63, %v221_v20 }
 0x173   :  { %v255_v24 = vadd.f32 %v238_v59, %v220_v15  ;;  %v261_v30 = vmax.f32 %v254_v18, 0.0  ;;  %v265_v40 = vmax.f32 %v258_v32, 0.0  ;;  %v325_v59 = vpop.permute.xlu0 %324 }
 0x174   :  { %v259_v23 = vmax.f32 %v252_v19, 0.0  ;;  %v253_v25 = vadd.f32 %v230_v2, %v218_v21  ;;  %v257_v36 = vadd.f32 %v246_v4, %v222_v26  ;;  %v263_v39 = vmax.f32 %v256_v28, 0.0 }
 0x175   :  { %v262_v34 = vmax.f32 %v255_v24, 0.0  ;;  %v303_v37 = vmul.f32 %v279_v27, %v261_v30  ;;  %v307_v48 = vmul.f32 %v299_v44, %v265_v40 }
 0x176   :  { %v260_v31 = vmax.f32 %v253_v25, 0.0  ;;  %v301_v33 = vmul.f32 %v269_v60, %v259_v23  ;;  %v264_v43 = vmax.f32 %v257_v36, 0.0  ;;  %v305_v46 = vmul.f32 %v289_v41, %v263_v39 }
 0x177   :  { %v304_v42 = vmul.f32 %v284_v3, %v262_v34  ;;  %v314_v52 = vsel %vm313_vm3, %v307_v48, 0.0 }
 0x178   :  { %v302_v35 = vmul.f32 %v274_v6, %v260_v31  ;;  %v306_v49 = vmul.f32 %v294_v29, %v264_v43 }
 0x17a   :  { %v308_v38 = vadd.f32 %v302_v35, %v301_v33 }
 0x17c   :  { %v309_v45 = vadd.f32 %v308_v38, %v303_v37 }
 0x17e   :  { %v310_v47 = vadd.f32 %v309_v45, %v304_v42 }
 0x180   :  { %v311_v50 = vadd.f32 %v310_v47, %v305_v46 }
 0x182   :  { %v312_v51 = vadd.f32 %v311_v50, %v306_v49 }
 0x184   :  { %v315_v53 = vadd.f32 %v314_v52, %v312_v51 }
 0x186   :  { %v316_v54 = vrot.slane %v315_v53, 4 }
 0x188   :  { %v317_v55 = vadd.f32 %v316_v54, %v315_v53 }
 0x18a   :  { %v318_v56 = vrot.slane %v317_v55, 2 }
 0x18c   :  { %v319_v57 = vadd.f32 %v318_v56, %v317_v55 }
 0x18e   :  { %v320_v58 = vrot.slane %v319_v57, 1 }
 0x190   :  { %v321_v60 = vadd.f32 %v320_v58, %v319_v57 }
 0x192   :  { %v327_v61 = vadd.f32 %v325_v59, %v321_v60 }
 0x194   :  { %328 = vst [vmem:[%s503_s4] sm:$0x1] %v327_v61 }

</bundles_post_ra>
